<compile_context>
chip_gen: v5e
topology: v5e:2x2
jax: 0.10.0
libtpu: 0.0.40
codegen_flags: <defaults>
</compile_context>

<pallas_src>
import jax
import jax.numpy as jnp
from jax.experimental import pallas as pl
from jax.experimental.pallas import tpu as pltpu


# ---------------------------------------------------------------------------
# Kernels: direct HBM -> HBM DMA copies (no grid, no VMEM staging).
# ---------------------------------------------------------------------------
def _hbm_copy_kernel(x_ref, o_ref, sem):
    cp = pltpu.make_async_copy(x_ref, o_ref, sem)
    cp.start()
    cp.wait()


def _hbm_copy2_kernel(a_ref, b_ref, oa_ref, ob_ref, sems):
    cp_a = pltpu.make_async_copy(a_ref, oa_ref, sems.at[0])
    cp_b = pltpu.make_async_copy(b_ref, ob_ref, sems.at[1])
    cp_a.start()
    cp_b.start()
    cp_a.wait()
    cp_b.wait()


# ---------------------------------------------------------------------------
# Wrappers
# ---------------------------------------------------------------------------
def materialize(x):
    """Return x's values in a DISTINCT output buffer via one HBM->HBM DMA.

    Only use when a fresh buffer is explicitly required; forward() itself is a
    zero-cost identity bypass.
    """
    x = jnp.asarray(x)
    return pl.pallas_call(
        _hbm_copy_kernel,
        out_shape=jax.ShapeDtypeStruct(x.shape, x.dtype),
        in_specs=[pl.BlockSpec(memory_space=pl.ANY)],
        out_specs=pl.BlockSpec(memory_space=pl.ANY),
        scratch_shapes=[pltpu.SemaphoreType.DMA],
        cost_estimate=pl.CostEstimate(
            flops=0, transcendentals=0, bytes_accessed=2 * x.nbytes),
    )(x)


def materialize_pair(a, b):
    """Fused materialization of (pre_activation, input): one pallas_call,
    two overlapping HBM->HBM DMAs."""
    a = jnp.asarray(a)
    b = jnp.asarray(b)
    oa, ob = pl.pallas_call(
        _hbm_copy2_kernel,
        out_shape=(jax.ShapeDtypeStruct(a.shape, a.dtype),
                   jax.ShapeDtypeStruct(b.shape, b.dtype)),
        in_specs=[pl.BlockSpec(memory_space=pl.ANY),
                  pl.BlockSpec(memory_space=pl.ANY)],
        out_specs=(pl.BlockSpec(memory_space=pl.ANY),
                   pl.BlockSpec(memory_space=pl.ANY)),
        scratch_shapes=[pltpu.SemaphoreType.DMA((2,))],
        cost_estimate=pl.CostEstimate(
            flops=0, transcendentals=0,
            bytes_accessed=2 * (a.nbytes + b.nbytes)),
    )(a, b)
    return oa, ob


# ---------------------------------------------------------------------------
# Module port
# ---------------------------------------------------------------------------
class ADNNBaseCellWeak:
    """JAX/Pallas port of _ADNNBaseCellWeak (identity pass-through forward)."""

    def __init__(self):
        self.adnn_compatibility = 1
        self.input_shape = None

    def reset_parameters(self):
        pass

    def _forward(self, x):
        # Weak contract: values must not change.  Unconditional identity
        # bypass — launching any copy would be pure overhead (perf review #1).
        return x

    def reverse(self, x):
        # Identity is its own inverse for the weak base cell.
        return x

    def forward(self, input, **kwargs):
        # NOTE: input_shape is a Python-side record; under jit it holds the
        # traced (static) shape, which matches the PyTorch module's behavior.
        self.input_shape = input.shape
        pre = kwargs.get("pre_activation", None)
        if pre is not None:
            return (self._forward(pre), self._forward(input))
        return self._forward(input)

    __call__ = forward


if __name__ == "__main__":
    key = jax.random.PRNGKey(0)
    k1, k2 = jax.random.split(key, 2)

    cell = ADNNBaseCellWeak()

    # Small module-consistent NCHW shapes.
    x = jax.random.normal(k1, (2, 4, 16, 16), dtype=jnp.float32)
    pre_act = jax.random.normal(k2, (2, 4, 16, 16), dtype=jnp.float32)

    # forward(): unconditional identity bypass — no kernel launch.
    y = jax.block_until_ready(cell(x))
    assert y.shape == x.shape and y.dtype == x.dtype
    assert jnp.allclose(y, x), "weak cell must not change values"
    assert cell.input_shape == x.shape

    y_pre, y_in = cell(x, pre_activation=pre_act)
    y_pre = jax.block_until_ready(y_pre)
    y_in = jax.block_until_ready(y_in)
    assert jnp.allclose(y_pre, pre_act)
    assert jnp.allclose(y_in, x)
    assert cell.input_shape == x.shape

    # Explicit materialization: run the Pallas HBM->HBM DMA kernel once.
    y_mat = jax.block_until_ready(materialize(x))
    assert y_mat.shape == x.shape and y_mat.dtype == x.dtype
    assert jnp.allclose(y_mat, x)

    # Fused pair materialization: one pallas_call, two inputs / two outputs.
    ya, yb = materialize_pair(pre_act, x)
    ya = jax.block_until_ready(ya)
    yb = jax.block_until_ready(yb)
    assert jnp.allclose(ya, pre_act)
    assert jnp.allclose(yb, x)

    print("KERNEL_OK")
</pallas_src>

<mosaic_0001>
module attributes {stable_mosaic.version = 11 : i64} {
  func.func @_hbm_copy_kernel(%arg0: memref<2x4x16x16xf32, #tpu.memory_space<any>>, %arg1: memref<2x4x16x16xf32, #tpu.memory_space<any>>, %arg2: memref<!tpu.dma_semaphore, #tpu.memory_space<semaphore_mem>>) attributes {dimension_semantics = [], scalar_prefetch = 0 : i64, scratch_operands = 1 : i64, tpu.core_type = #tpu.core_type<tc>} {
    tpu.enqueue_dma source(%arg0 : memref<2x4x16x16xf32, #tpu.memory_space<any>>) target(%arg1 : memref<2x4x16x16xf32, #tpu.memory_space<any>>) target_semaphore(%arg2 : memref<!tpu.dma_semaphore, #tpu.memory_space<semaphore_mem>>)
    tpu.wait_dma2 semaphore(%arg2 : memref<!tpu.dma_semaphore, #tpu.memory_space<semaphore_mem>>) src(%arg0 : memref<2x4x16x16xf32, #tpu.memory_space<any>>) dst(%arg1 : memref<2x4x16x16xf32, #tpu.memory_space<any>>)
    return
  }
}

</mosaic_0001>

<bundles_post_ra>
// kernel: tpu_custom_call.1
= control target key start
LH: loop header
LB: loop body
LE: loop exit
PB: predicated region body
PF: predicated region fallthrough
CT: control target
= control target key end

     0   :  { %s34_s12 = smov [#allocation2]   ;;  %s35_s13 = smov [#allocation3]   ;;  %s53_s0 = inlined_call_operand.hbm [shape: f32[2,4,16,16], index: 0, kind: input, shape index: {}]   ;;  %s54_s1 = inlined_call_operand.hbm [shape: f32[2,4,16,16], index: 1, kind: output, shape index: {}]  }
   0x1   :  { %s10_s8 = sshll.u32 %s53_s0, 4  ;;  %s12_s11 = sshll.u32 %s54_s1, 4  ;;  %s11_s8 = int_to_ptr.hbm [resolvable:$true] %s10_s8  ;;  %s13_s11 = int_to_ptr.hbm [resolvable:$true] %s12_s11 }
   0x2   :  { %s36_s14 = smov 0  }
   0x3   :  { %16 = dma.general %s11_s8, 2048, %s13_s11, %s34_s12, %s35_s13, [#allocation4], %s36_s14, 0  }
   0x4   :  { %32 = dma.done.wait [#allocation2], 2048 }
   0x5   :  { %33 = vsyncadd [#allocation2], 4294965248 }
   0x6   :  { %22 = vsyncmov [#allocation2] }
   0x9   :  { %s23_s15 = vpop.sfrf %22 }
   0xa   :  { %p28_p0 = scmp.ne.s32.totalorder %s23_s15, 0 }
   0xc   :  { %27 = shalt.err (%p28_p0)  }

</bundles_post_ra>
